<compile_context>
chip_gen: v7x
topology: tpu7x:2x2x1
jax: 0.10.0
libtpu: 0.0.40
codegen_flags: <defaults>
</compile_context>

<pallas_src>
import functools

import jax
import jax.numpy as jnp
from jax.experimental import pallas as pl
from jax.experimental.pallas import tpu as pltpu


# ----------------------------------------------------------------------------
# LayerNorm kernel
# ----------------------------------------------------------------------------
def _layernorm_kernel(x_ref, g_ref, b_ref, o_ref, *, eps):
    x = x_ref[...].astype(jnp.float32)                     # (TM, H)
    mean = jnp.mean(x, axis=-1, keepdims=True)             # (TM, 1)
    var = jnp.mean(x * x, axis=-1, keepdims=True) - mean * mean
    inv = jax.lax.rsqrt(var + eps)                         # per-row rsqrt (EUP, TM elems)
    g = g_ref[...].astype(jnp.float32)                     # (1, H)
    b = b_ref[...].astype(jnp.float32)                     # (1, H)
    o_ref[...] = (((x - mean) * inv) * g + b).astype(o_ref.dtype)


def layer_norm(x2d, gamma, beta, *, eps=1e-5, row_tile=256):
    R, H = x2d.shape
    tm = R if R <= row_tile else row_tile                  # row_tile is a multiple of 8
    g2d = gamma.reshape(1, H)
    b2d = beta.reshape(1, H)
    return pl.pallas_call(
        functools.partial(_layernorm_kernel, eps=eps),
        out_shape=jax.ShapeDtypeStruct((R, H), x2d.dtype),
        grid=(pl.cdiv(R, tm),),
        in_specs=[
            pl.BlockSpec((tm, H), lambda i: (i, 0)),
            pl.BlockSpec((1, H), lambda i: (0, 0)),        # gamma stays VMEM-resident
            pl.BlockSpec((1, H), lambda i: (0, 0)),        # beta stays VMEM-resident
        ],
        out_specs=pl.BlockSpec((tm, H), lambda i: (i, 0)),
        compiler_params=pltpu.CompilerParams(dimension_semantics=("parallel",)),
    )(x2d, g2d, b2d)


# ----------------------------------------------------------------------------
# Linear (matmul + optional bias + optional residual) kernel
# ----------------------------------------------------------------------------
def _linear_kernel(*refs, has_bias, has_residual):
    idx = 0
    x_ref = refs[idx]; idx += 1
    w_ref = refs[idx]; idx += 1
    b_ref = refs[idx] if has_bias else None
    idx += 1 if has_bias else 0
    r_ref = refs[idx] if has_residual else None
    idx += 1 if has_residual else 0
    o_ref = refs[idx]; idx += 1
    acc_ref = refs[idx]

    k = pl.program_id(2)

    @pl.when(k == 0)
    def _():
        acc_ref[...] = jnp.zeros_like(acc_ref)

    acc_ref[...] += jnp.dot(
        x_ref[...].astype(jnp.float32),
        w_ref[...].astype(jnp.float32),
        preferred_element_type=jnp.float32,
    )

    @pl.when(k == pl.num_programs(2) - 1)
    def _():
        out = acc_ref[...]
        if has_bias:
            out = out + b_ref[...].astype(jnp.float32)
        if has_residual:
            out = out + r_ref[...].astype(jnp.float32)
        o_ref[...] = out.astype(o_ref.dtype)


def _k_tile(k_dim, target=512):
    """Largest multiple-of-128 divisor of k_dim that is <= target (or full K)."""
    if k_dim <= target:
        return k_dim
    t = (target // 128) * 128
    while t >= 128:
        if k_dim % t == 0:
            return t
        t -= 128
    return k_dim


def linear(x, w, bias=None, residual=None, *, tm_target=256, tn_target=256, tk_target=512):
    M, K = x.shape
    Kw, N = w.shape
    assert K == Kw
    tm = M if M <= tm_target else tm_target
    tn = N if N <= tn_target else tn_target
    tk = _k_tile(K, tk_target)

    operands = [x, w]
    in_specs = [
        pl.BlockSpec((tm, tk), lambda i, j, k: (i, k)),
        pl.BlockSpec((tk, tn), lambda i, j, k: (k, j)),
    ]
    if bias is not None:
        operands.append(bias.reshape(1, N))
        in_specs.append(pl.BlockSpec((1, tn), lambda i, j, k: (0, j)))
    if residual is not None:
        operands.append(residual)
        in_specs.append(pl.BlockSpec((tm, tn), lambda i, j, k: (i, j)))

    kernel = functools.partial(
        _linear_kernel, has_bias=bias is not None, has_residual=residual is not None)

    return pl.pallas_call(
        kernel,
        out_shape=jax.ShapeDtypeStruct((M, N), x.dtype),
        grid=(pl.cdiv(M, tm), pl.cdiv(N, tn), K // tk),
        in_specs=in_specs,
        out_specs=pl.BlockSpec((tm, tn), lambda i, j, k: (i, j)),
        scratch_shapes=[pltpu.VMEM((tm, tn), jnp.float32)],
        compiler_params=pltpu.CompilerParams(
            dimension_semantics=("parallel", "parallel", "arbitrary")),
    )(*operands)


# ----------------------------------------------------------------------------
# Attention kernel (one (batch*head) slice per grid step)
# ----------------------------------------------------------------------------
def _attention_kernel(q_ref, k_ref, v_ref, o_ref, *, scale):
    q = q_ref[0].astype(jnp.float32) * scale               # (N, D)
    k = k_ref[0].astype(jnp.float32)                       # (N, D)
    v = v_ref[0].astype(jnp.float32)                       # (N, D)
    # scores = q @ k^T without materializing a transpose.
    s = jax.lax.dot_general(q, k, (((1,), (1,)), ((), ())),
                            preferred_element_type=jnp.float32)      # (N, N)
    m = jnp.max(s, axis=-1, keepdims=True)
    p = jnp.exp(s - m)
    l = jnp.sum(p, axis=-1, keepdims=True)
    ctx = jnp.dot(p, v, preferred_element_type=jnp.float32)
    # Per-row reciprocal + broadcast multiply (no per-element divide).
    o_ref[0] = (ctx * (1.0 / l)).astype(o_ref.dtype)


def attention(q, k, v, scale):
    # q, k, v: (B*H, N, D)
    # TODO(synk): switch to a flash-style KV-tiled grid for long sequences;
    # this single-block-per-head path is fine for the short demo sequence.
    BH, N, D = q.shape
    return pl.pallas_call(
        functools.partial(_attention_kernel, scale=scale),
        out_shape=jax.ShapeDtypeStruct((BH, N, D), q.dtype),
        grid=(BH,),
        in_specs=[pl.BlockSpec((1, N, D), lambda i: (i, 0, 0))] * 3,
        out_specs=pl.BlockSpec((1, N, D), lambda i: (i, 0, 0)),
        compiler_params=pltpu.CompilerParams(dimension_semantics=("parallel",)),
    )(q, k, v)


# ----------------------------------------------------------------------------
# Full Block forward (composition of the Pallas kernels)
# ----------------------------------------------------------------------------
def block_forward(x, params, *, num_heads):
    B, N, C = x.shape
    D = C // num_heads
    scale = float(D) ** -0.5
    x2d = x.reshape(B * N, C)

    # ---- attention branch: x = x + proj(attn(norm1(x))) ----
    h = layer_norm(x2d, params["ln1_g"], params["ln1_b"], eps=1e-5)
    qkv = linear(h, params["w_qkv"])                                   # (BN, 3C), no bias
    qkv = qkv.reshape(B, N, 3, num_heads, D)
    q = qkv[:, :, 0].transpose(0, 2, 1, 3).reshape(B * num_heads, N, D)
    k = qkv[:, :, 1].transpose(0, 2, 1, 3).reshape(B * num_heads, N, D)
    v = qkv[:, :, 2].transpose(0, 2, 1, 3).reshape(B * num_heads, N, D)
    ctx = attention(q, k, v, scale)                                    # (BH, N, D)
    ctx = ctx.reshape(B, num_heads, N, D).transpose(0, 2, 1, 3).reshape(B * N, C)
    x2d = linear(ctx, params["w_proj"], bias=params["b_proj"], residual=x2d)

    # ---- MLP branch: x = x + fc2(gelu(fc1(norm2(x)))) ----
    h2 = layer_norm(x2d, params["ln2_g"], params["ln2_b"], eps=1e-5)
    hid = linear(h2, params["w_fc1"], bias=params["b_fc1"])
    # TODO(synk): fuse the exact (erf) GELU into the fc1 epilogue once erf
    # lowering in Mosaic is confirmed; kept at the JAX level here to preserve
    # the exact nn.GELU() semantics of the PyTorch module.
    hid = jax.nn.gelu(hid, approximate=False)
    x2d = linear(hid, params["w_fc2"], bias=params["b_fc2"], residual=x2d)

    return x2d.reshape(B, N, C)


# ----------------------------------------------------------------------------
# Pure-JAX reference (matches the PyTorch Block forward, default config)
# ----------------------------------------------------------------------------
def _reference_block(x, params, *, num_heads):
    hp = jax.lax.Precision.HIGHEST
    B, N, C = x.shape
    D = C // num_heads
    scale = float(D) ** -0.5

    def ln(t, g, b, eps=1e-5):
        mu = jnp.mean(t, axis=-1, keepdims=True)
        var = jnp.mean(jnp.square(t - mu), axis=-1, keepdims=True)
        return (t - mu) * jax.lax.rsqrt(var + eps) * g + b

    xf = x.astype(jnp.float32)
    h = ln(xf, params["ln1_g"], params["ln1_b"])
    qkv = jnp.einsum("bnc,cd->bnd", h, params["w_qkv"], precision=hp)
    qkv = qkv.reshape(B, N, 3, num_heads, D).transpose(2, 0, 3, 1, 4)   # (3,B,H,N,D)
    q, k, v = qkv[0], qkv[1], qkv[2]
    attn = jnp.einsum("bhnd,bhmd->bhnm", q * scale, k, precision=hp)
    attn = jax.nn.softmax(attn, axis=-1)
    ctx = jnp.einsum("bhnm,bhmd->bhnd", attn, v, precision=hp)
    ctx = ctx.transpose(0, 2, 1, 3).reshape(B, N, C)
    xf = xf + jnp.einsum("bnc,cd->bnd", ctx, params["w_proj"], precision=hp) + params["b_proj"]
    h2 = ln(xf, params["ln2_g"], params["ln2_b"])
    hid = jnp.einsum("bnc,ch->bnh", h2, params["w_fc1"], precision=hp) + params["b_fc1"]
    hid = jax.nn.gelu(hid, approximate=False)
    xf = xf + jnp.einsum("bnh,hc->bnc", hid, params["w_fc2"], precision=hp) + params["b_fc2"]
    return xf.astype(x.dtype)


if __name__ == "__main__":
    B, N_TOK, C, HEADS = 2, 8, 32, 4
    HID = 4 * C

    key = jax.random.PRNGKey(0)
    ks = jax.random.split(key, 12)

    def winit(k, shape, fan_in):
        return (jax.random.normal(k, shape, jnp.float32) / jnp.sqrt(float(fan_in)))

    params = {
        "ln1_g": 1.0 + 0.1 * jax.random.normal(ks[0], (C,), jnp.float32),
        "ln1_b": 0.1 * jax.random.normal(ks[1], (C,), jnp.float32),
        "w_qkv": winit(ks[2], (C, 3 * C), C),                # Linear(dim, 3*dim, bias=False)
        "w_proj": winit(ks[3], (C, C), C),                   # Linear(dim, dim)
        "b_proj": 0.1 * jax.random.normal(ks[4], (C,), jnp.float32),
        "ln2_g": 1.0 + 0.1 * jax.random.normal(ks[5], (C,), jnp.float32),
        "ln2_b": 0.1 * jax.random.normal(ks[6], (C,), jnp.float32),
        "w_fc1": winit(ks[7], (C, HID), C),                  # Linear(dim, 4*dim)
        "b_fc1": 0.1 * jax.random.normal(ks[8], (HID,), jnp.float32),
        "w_fc2": winit(ks[9], (HID, C), HID),                # Linear(4*dim, dim)
        "b_fc2": 0.1 * jax.random.normal(ks[10], (C,), jnp.float32),
    }
    x = jax.random.normal(ks[11], (B, N_TOK, C), jnp.float32)

    out = block_forward(x, params, num_heads=HEADS)
    out = jax.block_until_ready(out)

    ref = _reference_block(x, params, num_heads=HEADS)
    assert out.shape == x.shape and out.dtype == x.dtype
    # Tolerance covers the difference between MXU f32 matmul passes inside the
    # Pallas kernels and the HIGHEST-precision XLA reference matmuls.
    assert jnp.allclose(out, ref, atol=2e-2, rtol=2e-2), "mismatch vs reference"

    print("KERNEL_OK")
</pallas_src>

<mosaic_0001>
module attributes {stable_mosaic.version = 11 : i64} {
  func.func @_layernorm_kernel(%arg0: i32, %arg1: memref<16x32xf32, #tpu.memory_space<vmem>>, %arg2: memref<1x32xf32, #tpu.memory_space<vmem>>, %arg3: memref<1x32xf32, #tpu.memory_space<vmem>>, %arg4: memref<16x32xf32, #tpu.memory_space<vmem>>) attributes {dimension_semantics = [#tpu.dimension_semantics<parallel>], iteration_bounds = array<i64: 1>, scalar_prefetch = 0 : i64, scratch_operands = 0 : i64, tpu.core_type = #tpu.core_type<tc>, window_params = [{transform_indices = @transform_0, window_bounds = array<i64: 16, 32>}, {pipeline_mode = #tpu.pipeline_mode<synchronous>, transform_indices = @transform_1, window_bounds = array<i64: 1, 32>}, {pipeline_mode = #tpu.pipeline_mode<synchronous>, transform_indices = @transform_2, window_bounds = array<i64: 1, 32>}, {transform_indices = @transform_3, window_bounds = array<i64: 16, 32>}]} {
    %c0 = arith.constant 0 : index
    %c0_0 = arith.constant 0 : index
    %0 = vector.load %arg1[%c0, %c0_0] : memref<16x32xf32, #tpu.memory_space<vmem>>, vector<16x32xf32>
    %cst = arith.constant dense<0.000000e+00> : vector<16xf32>
    %1 = vector.multi_reduction <add>, %0, %cst [1] : vector<16x32xf32> to vector<16xf32>
    %2 = vector.shape_cast %1 : vector<16xf32> to vector<16x1xf32>
    %cst_1 = arith.constant 3.200000e+01 : f32
    %3 = vector.broadcast %cst_1 : f32 to vector<16x1xf32>
    %4 = arith.divf %2, %3 : vector<16x1xf32>
    %5 = arith.mulf %0, %0 : vector<16x32xf32>
    %cst_2 = arith.constant dense<0.000000e+00> : vector<16xf32>
    %6 = vector.multi_reduction <add>, %5, %cst_2 [1] : vector<16x32xf32> to vector<16xf32>
    %7 = vector.shape_cast %6 : vector<16xf32> to vector<16x1xf32>
    %cst_3 = arith.constant 3.200000e+01 : f32
    %8 = vector.broadcast %cst_3 : f32 to vector<16x1xf32>
    %9 = arith.divf %7, %8 : vector<16x1xf32>
    %10 = arith.mulf %4, %4 : vector<16x1xf32>
    %11 = arith.subf %9, %10 : vector<16x1xf32>
    %cst_4 = arith.constant 9.99999974E-6 : f32
    %12 = vector.broadcast %cst_4 : f32 to vector<16x1xf32>
    %13 = arith.addf %11, %12 : vector<16x1xf32>
    %14 = math.rsqrt %13 : vector<16x1xf32>
    %c0_5 = arith.constant 0 : index
    %c0_6 = arith.constant 0 : index
    %15 = vector.load %arg2[%c0_5, %c0_6] : memref<1x32xf32, #tpu.memory_space<vmem>>, vector<1x32xf32>
    %c0_7 = arith.constant 0 : index
    %c0_8 = arith.constant 0 : index
    %16 = vector.load %arg3[%c0_7, %c0_8] : memref<1x32xf32, #tpu.memory_space<vmem>>, vector<1x32xf32>
    %17 = vector.broadcast %4 : vector<16x1xf32> to vector<16x32xf32>
    %18 = arith.subf %0, %17 : vector<16x32xf32>
    %19 = vector.broadcast %14 : vector<16x1xf32> to vector<16x32xf32>
    %20 = arith.mulf %18, %19 : vector<16x32xf32>
    %21 = vector.broadcast %15 : vector<1x32xf32> to vector<16x32xf32>
    %22 = arith.mulf %20, %21 : vector<16x32xf32>
    %23 = vector.broadcast %16 : vector<1x32xf32> to vector<16x32xf32>
    %24 = arith.addf %22, %23 : vector<16x32xf32>
    %c0_9 = arith.constant 0 : index
    %c0_10 = arith.constant 0 : index
    %25 = vector.load %arg4[%c0_9, %c0_10] : memref<16x32xf32, #tpu.memory_space<vmem>>, vector<16x32xf32>
    tpu.vector_store %arg4[%c0_9, %c0_10], %24 {strides = array<i32>} : memref<16x32xf32, #tpu.memory_space<vmem>>, vector<16x32xf32>,
    return
  }
  func.func @transform_0(%arg0: i32) -> (i32, i32) {
    %c0_i32 = arith.constant 0 : i32
    %c0_i32_0 = arith.constant 0 : i32
    return %arg0, %c0_i32 : i32, i32
  }
  func.func @transform_1(%arg0: i32) -> (i32, i32) {
    %c0_i32 = arith.constant 0 : i32
    %c0_i32_0 = arith.constant 0 : i32
    %c0_i32_1 = arith.constant 0 : i32
    return %c0_i32, %c0_i32_0 : i32, i32
  }
  func.func @transform_2(%arg0: i32) -> (i32, i32) {
    %c0_i32 = arith.constant 0 : i32
    %c0_i32_0 = arith.constant 0 : i32
    %c0_i32_1 = arith.constant 0 : i32
    return %c0_i32, %c0_i32_0 : i32, i32
  }
  func.func @transform_3(%arg0: i32) -> (i32, i32) {
    %c0_i32 = arith.constant 0 : i32
    %c0_i32_0 = arith.constant 0 : i32
    return %arg0, %c0_i32 : i32, i32
  }
}

</mosaic_0001>

<bundles_post_ra>
// kernel: tpu_custom_call.1
= control target key start
LH: loop header
LB: loop body
LE: loop exit
PB: predicated region body
PF: predicated region fallthrough
CT: control target
= control target key end

     0   :  { %8 = vsyncpa [#allocation3], 0  ;;  %s224_s0 = inlined_call_operand.hbm [shape: f32[16,32], index: 0, kind: input, shape index: {}]   ;;  %s225_s1 = inlined_call_operand.vmem [shape: f32[1,32], index: 1, kind: input, shape index: {}]   ;;  %s226_s2 = inlined_call_operand.vmem [shape: f32[1,32], index: 2, kind: input, shape index: {}]   ;;  %s227_s3 = inlined_call_operand.hbm [shape: f32[16,32], index: 3, kind: output, shape index: {}]  }
   0x1   :  { %9 = vsyncpa [#allocation4], 0  ;;  %s158_s12 = smov [#allocation2]   ;;  %s110_s16 = scalar_lea.hbm %s224_s0, 256 }
   0x2   :  { %s15_s13 = sshll.u32 %s158_s12, 4  ;;  %p111_p0 = scmp.ne.s32.totalorder %s224_s0, %s110_s16  ;;  %s16_s13 = int_to_ptr.vmem [resolvable:$true] %s15_s13 }
   0x3   :  { %p114_p1 = scmp.lt.u32.totalorder %s110_s16, %s224_s0 }
   0x5   :  { %p116_p2 = pnand %p114_p1, %p111_p0 }
   0x7   :  { %119 = shalt.err (!%p116_p2)
}
   0x8   :  { %s120_s21 = scalar_lea.vmem %s16_s13, 256  ;;  %p125_p4 = scmp.lt.s32.totalorder %s16_s13, %s16_s13 }
   0x9   :  { %p121_p3 = scmp.ne.s32.totalorder %s16_s13, %s120_s21  ;;  %p126_p5 = scmp.lt.s32.totalorder %s120_s21, %s120_s21 }
   0xb   :  { %p127_p6 = por %p126_p5, %p125_p4 }
   0xd   :  { %p128_p7 = pnand %p127_p6, %p121_p3 }
   0xf   :  { %131 = shalt.err (!%p128_p7)
}
  0x10   :  { %s159_s22 = smov 128   ;;  %s160_s23 = smov 8  }
  0x11   :  { %21 = dma.hbm_to_vmem [thread:$0]  %s224_s0, 256, %s16_s13, [#allocation3], %s159_s22, %s159_s22, %s160_s23  }
  0x12   :  { %154 = dma.done.wait [#allocation3], 256  }
  0x13   :  { %155 = vsyncadd [#allocation3], 4294967040  ;;  %vm31_vm0 = vcmask 261120   ;;  %v29_v0 = vld [vmem:[#allocation2] sm:$0xff]  ;;  %v30_v1 = vld [vmem:[#allocation2 + $0x8] sm:$0xff]  ;;  %s161_s29 = smov [#allocation5]  }
  0x14   :  { %v32_v2 = vsel %vm31_vm0, %v29_v0, 0.0  ;;  %v41_v3 = vmul.f32 %v29_v0, %v29_v0  ;;  %v42_v4 = vmul.f32 %v30_v1, %v30_v1  ;;  %v35_v6 = vsel %vm31_vm0, %v30_v1, 0.0  ;;  %v100_v24 = vld [vmem:[%s225_s1] ss:$0 sm:$0xff]  ;;  %s88_s30 = sshll.u32 %s161_s29, 4  ;;  %s89_s30 = int_to_ptr.vmem [resolvable:$true] %s88_s30 }
  0x15   :  { %33 = vadd.xlane.f32.xlu0 %v32_v2  ;;  %v101_v26 = vld [vmem:[%s226_s2] ss:$0 sm:$0xff]  ;;  %s132_s1 = scalar_lea.vmem %s89_s30, 256  ;;  %p137_p9 = scmp.lt.s32.totalorder %s89_s30, %s89_s30 }
  0x16   :  { %v43_v5 = vsel %vm31_vm0, %v41_v3, 0.0  ;;  %v46_v7 = vsel %vm31_vm0, %v42_v4, 0.0  ;;  %p133_p8 = scmp.ne.s32.totalorder %s89_s30, %s132_s1  ;;  %p138_p10 = scmp.lt.s32.totalorder %s132_s1, %s132_s1 }
  0x17   :  { %44 = vadd.xlane.f32.xlu1 %v43_v5 }
  0x18   :  { %p139_p11 = por %p138_p10, %p137_p9 }
  0x19   :  { %36 = vadd.xlane.f32.xlu0 %v35_v6 }
  0x1a   :  { %p140_p12 = pnand %p139_p11, %p133_p8 }
  0x1b   :  { %47 = vadd.xlane.f32.xlu1 %v46_v7 }
  0xa2   :  { %v34_v8 = vpop.xlane.xlu0 %33 }
  0xa3   :  { %v39_v9 = vmul.f32 0.03125, %v34_v8 }
  0xa4   :  { %v45_v10 = vpop.xlane.xlu1 %44 }
  0xa5   :  { %v51_v11 = vmul.f32 %v39_v9, %v39_v9  ;;  %v49_v12 = vmul.f32 0.03125, %v45_v10  ;;  %v61_v22 = vsub.f32 %v29_v0, %v39_v9 }
  0xa6   :  { %v37_v13 = vpop.xlane.xlu0 %36 }
  0xa7   :  { %v53_v14 = vsub.f32 %v49_v12, %v51_v11  ;;  %v40_v15 = vmul.f32 0.03125, %v37_v13 }
  0xa8   :  { %v48_v16 = vpop.xlane.xlu1 %47 }
  0xa9   :  { %v55_v17 = vadd.f32 1e-05, %v53_v14  ;;  %v52_v18 = vmul.f32 %v40_v15, %v40_v15  ;;  %v50_v19 = vmul.f32 0.03125, %v48_v16  ;;  %v62_v27 = vsub.f32 %v30_v1, %v40_v15 }
  0xab   :  { %106 = vrsqrt.f32 %v55_v17  ;;  %v54_v20 = vsub.f32 %v50_v19, %v52_v18 }
  0xad   :  { %v56_v21 = vadd.f32 1e-05, %v54_v20 }
  0xaf   :  { %108 = vrsqrt.f32 %v56_v21 }
  0xb5   :  { %v107_v23 = vpop.eup %106 }
  0xb6   :  { %v63_v25 = vmul.f32 %v107_v23, %v61_v22 }
  0xb8   :  { %v71_v28 = vmul.f32 %v100_v24, %v63_v25 }
  0xb9   :  { %v109_v29 = vpop.eup %108 }
  0xba   :  { %v64_v30 = vmul.f32 %v109_v29, %v62_v27  ;;  %v79_v31 = vadd.f32 %v101_v26, %v71_v28 }
  0xbc   :  { %v72_v32 = vmul.f32 %v100_v24, %v64_v30  ;;  %81 = vst.msk [vmem:[#allocation5] sm:$0xff] %vm31_vm0, %v79_v31 }
  0xbe   :  { %v80_v33 = vadd.f32 %v101_v26, %v72_v32 }
  0xc0   :  { %82 = vst.msk [vmem:[#allocation5 + $0x8] sm:$0xff] %vm31_vm0, %v80_v33 }
  0xc1   :  { %143 = shalt.err (!%p140_p12)
}
  0xc2   :  { %s144_s5 = scalar_lea.hbm %s227_s3, 256 }
  0xc3   :  { %p145_p13 = scmp.ne.s32.totalorder %s227_s3, %s144_s5  ;;  %p148_p0 = scmp.lt.u32.totalorder %s144_s5, %s227_s3 }
  0xc5   :  { %p150_p1 = pnand %p148_p0, %p145_p13 }
  0xc7   :  { %153 = shalt.err (!%p150_p1)
}
  0xc8   :  { %94 = dma.vmem_to_hbm [thread:$0]  %s89_s30, 256, %s227_s3, [#allocation4], %s159_s22, %s159_s22, %s160_s23  }
  0xc9   :  { %156 = dma.done.wait [#allocation4], 256  }
  0xca   :  { %157 = vsyncadd [#allocation4], 4294967040 }
  0xcb   :  { %98 = vsyncpa [#allocation3], 1 }
  0xcc   :  { %99 = vsyncpa [#allocation4], 1 }

</bundles_post_ra>
